<compile_context>
chip_gen: v5e
topology: v5e:2x2
jax: 0.10.0
libtpu: 0.0.40
codegen_flags: <defaults>
</compile_context>

<pallas_src>
import jax
import jax.numpy as jnp
from jax import lax
from jax.experimental import pallas as pl
from jax.experimental.pallas import tpu as pltpu


# dot_general dims for A @ B^T (contract both operands' last axis) — the same
# "NT" orientation the reference flash-attention kernel uses for q @ k^T.
_NT_DIMS = (((1,), (1,)), ((), ()))


# ------------------------------------------------------------------ kernel --
def critic_kernel(x_ref, w1_ref, b1_ref, w2_ref, b2_ref, w3_ref, b3_ref, o_ref):
    # fc1 + relu. The state tile stays f32 in HBM/VMEM; the bf16 cast happens
    # here on the VPU (no separate XLA convert pass over the whole batch).
    x = x_ref[...].astype(jnp.bfloat16)
    h1 = jnp.dot(x, w1_ref[...], preferred_element_type=jnp.float32)
    h1 = jnp.maximum(h1 + b1_ref[...], 0.0).astype(jnp.bfloat16)
    # fc2 + relu (bf16 MXU inputs, f32 accumulation).
    h2 = jnp.dot(h1, w2_ref[...], preferred_element_type=jnp.float32)
    h2 = jnp.maximum(h2 + b2_ref[...], 0.0)
    # fc_critic (out_features=1): computed as (1,F2) @ (TB,F2)^T -> (1, TB) so
    # the per-row values land lane-dense (full-width stores, contiguous
    # writeback DMA) instead of a (TB,1) column forcing masked partial stores.
    v = lax.dot_general(w3_ref[...], h2, _NT_DIMS,
                        preferred_element_type=jnp.float32)
    o_ref[...] = (v + b3_ref[0]).reshape(o_ref.shape).astype(o_ref.dtype)


# ----------------------------------------------------------------- wrapper --
def _round_up(x, m):
    return ((x + m - 1) // m) * m


def _vmem_bytes_estimate(TB, S, F1, F2):
    x_blk = 2 * TB * S * 4                 # double-buffered f32 state tile
    h1 = TB * F1 * (4 + 2)                 # f32 accum + bf16 copy
    h2 = TB * F2 * 4
    out = 2 * TB * 4                       # double-buffered (1,1,TB) f32
    wts = 2 * (S * F1 * 2 + F1 * F2 * 2 + (F1 + 2 * F2 + 1) * 4)
    return x_blk + h1 + h2 + out + wts


def critic_forward(state, params, tb=2048):
    """state: (B, state_size) f32 -> value: (B, 1) f32.

    tb: max batch tile (sweep 2048-4096 for very large B). The actual tile is a
    multiple of 16, at most tb, and capped near B/2 so the batch grid keeps at
    least two steps (lets the "parallel" axis shard across v7x's TensorCores).
    """
    w1, b1, w2, b2, w3, b3 = params
    B, S = state.shape
    F1 = w1.shape[1]
    F2 = w2.shape[1]

    # bf16 weights for the two big matmuls; biases + value head stay f32.
    w1b = w1.astype(jnp.bfloat16)
    w2b = w2.astype(jnp.bfloat16)
    b1r = b1.reshape(1, F1).astype(jnp.float32)
    b2r = b2.reshape(1, F2).astype(jnp.float32)
    w3r = w3.reshape(1, F2).astype(jnp.float32)   # row for the NT value head
    b3s = b3.reshape(1).astype(jnp.float32)       # scalar bias via SMEM

    # Batch tile. No input padding: the grid uses pl.cdiv, Pallas bounds the
    # DMA of the ragged last block; garbage rows only produce garbage output
    # slots that are sliced off below.
    TB = max(16, min(tb, _round_up(pl.cdiv(B, 2), 16)))
    G = pl.cdiv(B, TB)

    # Raise the scoped-VMEM limit only if the estimate nears the smallest
    # (v5e, 16 MiB) default; capped at 64 MiB so it stays sane on v7x.
    est = _vmem_bytes_estimate(TB, S, F1, F2)
    vmem_limit = None
    if est > 12 * 2**20:
        vmem_limit = min(2 * est, 64 * 2**20)

    def const_spec(a):
        # Same block index every step -> DMA'd once, stays resident in VMEM.
        return pl.BlockSpec(a.shape, lambda i, _nd=a.ndim: (0,) * _nd)

    out = pl.pallas_call(
        critic_kernel,
        out_shape=jax.ShapeDtypeStruct((G, 1, TB), jnp.float32),
        grid=(G,),
        in_specs=[
            pl.BlockSpec((TB, S), lambda i: (i, 0)),            # state tile f32
            const_spec(w1b),                                    # (S,  F1) bf16
            const_spec(b1r),                                    # (1,  F1) f32
            const_spec(w2b),                                    # (F1, F2) bf16
            const_spec(b2r),                                    # (1,  F2) f32
            const_spec(w3r),                                    # (1,  F2) f32
            pl.BlockSpec(memory_space=pltpu.MemorySpace.SMEM),  # b3 scalar
        ],
        out_specs=pl.BlockSpec((1, 1, TB), lambda i: (i, 0, 0)),
        compiler_params=pltpu.CompilerParams(
            dimension_semantics=("parallel",),
            vmem_limit_bytes=vmem_limit),
    )(state, w1b, b1r, w2b, b2r, w3r, b3s)

    # (G, 1, TB) row-major flatten is batch order; drop padded slots.
    return out.reshape(-1)[:B].reshape(B, 1)


# ------------------------------------------------------ deterministic init --
def orthogonal(key, rows, cols, scale=1.0):
    """Mimics torch.nn.init.orthogonal_ on a (rows, cols) weight."""
    n, m = max(rows, cols), min(rows, cols)
    a = jax.random.normal(key, (n, m), dtype=jnp.float32)
    q, r = jnp.linalg.qr(a)
    d = jnp.diagonal(r)
    q = q * jnp.where(d >= 0, 1.0, -1.0)       # deterministic sign, no sign(0)
    if rows < cols:
        q = q.T
    return scale * q[:rows, :cols]


def init_params(key, state_size, fc1_units=256, fc2_units=128):
    k1, k2, k3 = jax.random.split(key, 3)
    # torch Linear weight is (out, in); we store transposed (in, out).
    w1 = orthogonal(k1, fc1_units, state_size).T          # (state_size, fc1)
    b1 = jnp.zeros((1, fc1_units), jnp.float32)
    w2 = orthogonal(k2, fc2_units, fc1_units).T            # (fc1, fc2)
    b2 = jnp.zeros((1, fc2_units), jnp.float32)
    w3 = orthogonal(k3, 1, fc2_units).T                    # (fc2, 1)
    b3 = jnp.zeros((1, 1), jnp.float32)
    return (w1, b1, w2, b2, w3, b3)


# ----------------------------------------------------------- plain-JAX ref --
def critic_ref(state, params):
    """Reference mirroring the kernel's bf16-input / f32-accumulate scheme."""
    w1, b1, w2, b2, w3, b3 = params
    x = state.astype(jnp.bfloat16)
    h1 = jnp.dot(x, w1.astype(jnp.bfloat16),
                 preferred_element_type=jnp.float32) + b1.reshape(1, -1)
    h1 = jnp.maximum(h1, 0.0).astype(jnp.bfloat16)
    h2 = jnp.dot(h1, w2.astype(jnp.bfloat16),
                 preferred_element_type=jnp.float32) + b2.reshape(1, -1)
    h2 = jnp.maximum(h2, 0.0)
    return h2 @ w3 + b3


if __name__ == "__main__":
    key = jax.random.PRNGKey(0)
    k_x, k_p = jax.random.split(key)

    # Small test shapes: batch not a multiple of any tile exercises the
    # ragged (bounded-DMA) last block and the padded-slot slicing.
    B, state_size = 200, 32
    state = jax.random.normal(k_x, (B, state_size), dtype=jnp.float32)
    params = init_params(k_p, state_size, fc1_units=256, fc2_units=128)

    ref = critic_ref(state, params)

    # Small tile: 4 grid steps, last block partially out of bounds.
    v_small = jax.block_until_ready(critic_forward(state, params, tb=64))
    # Default tile: TB capped to ~B/2 -> 2 grid steps, also ragged.
    v_default = jax.block_until_ready(critic_forward(state, params))

    for v in (v_small, v_default):
        assert v.shape == (B, 1)
        max_err = float(jnp.max(jnp.abs(v - ref)))
        assert jnp.allclose(v, ref, atol=1e-2, rtol=1e-2), max_err

    print("KERNEL_OK")
</pallas_src>

<mosaic_0001>
module attributes {stable_mosaic.version = 11 : i64} {
  func.func @critic_kernel(%arg0: i32, %arg1: memref<64x32xf32, #tpu.memory_space<vmem>>, %arg2: memref<32x256xbf16, #tpu.memory_space<vmem>>, %arg3: memref<1x256xf32, #tpu.memory_space<vmem>>, %arg4: memref<256x128xbf16, #tpu.memory_space<vmem>>, %arg5: memref<1x128xf32, #tpu.memory_space<vmem>>, %arg6: memref<1x128xf32, #tpu.memory_space<vmem>>, %arg7: memref<1xf32, #tpu.memory_space<smem>>, %arg8: memref<1x1x64xf32, #tpu.memory_space<vmem>>) attributes {dimension_semantics = [#tpu.dimension_semantics<parallel>], iteration_bounds = array<i64: 4>, scalar_prefetch = 0 : i64, scratch_operands = 0 : i64, tpu.core_type = #tpu.core_type<tc>, window_params = [{transform_indices = @transform_0, window_bounds = array<i64: 64, 32>}, {pipeline_mode = #tpu.pipeline_mode<synchronous>, transform_indices = @transform_1, window_bounds = array<i64: 32, 256>}, {pipeline_mode = #tpu.pipeline_mode<synchronous>, transform_indices = @transform_2, window_bounds = array<i64: 1, 256>}, {pipeline_mode = #tpu.pipeline_mode<synchronous>, transform_indices = @transform_3, window_bounds = array<i64: 256, 128>}, {pipeline_mode = #tpu.pipeline_mode<synchronous>, transform_indices = @transform_4, window_bounds = array<i64: 1, 128>}, {pipeline_mode = #tpu.pipeline_mode<synchronous>, transform_indices = @transform_5, window_bounds = array<i64: 1, 128>}, {transform_indices = @transform_6, window_bounds = array<i64: 1>}, {transform_indices = @transform_7, window_bounds = array<i64: 1, 1, 64>}]} {
    %c0 = arith.constant 0 : index
    %c0_0 = arith.constant 0 : index
    %0 = vector.load %arg1[%c0, %c0_0] : memref<64x32xf32, #tpu.memory_space<vmem>>, vector<64x32xf32>
    %1 = arith.truncf %0 : vector<64x32xf32> to vector<64x32xbf16>
    %c0_1 = arith.constant 0 : index
    %c0_2 = arith.constant 0 : index
    %2 = vector.load %arg2[%c0_1, %c0_2] : memref<32x256xbf16, #tpu.memory_space<vmem>>, vector<32x256xbf16>
    %cst = arith.constant dense<0.000000e+00> : vector<64x256xf32>
    %3 = tpu.matmul %1, %2, %cst {dimension_numbers = #tpu.dot_dimension_numbers<[1], [0], [0], [1], [0, 0, 1, 1], [], []>} : vector<64x32xbf16>, vector<32x256xbf16>, vector<64x256xf32> -> vector<64x256xf32>
    %c0_3 = arith.constant 0 : index
    %c0_4 = arith.constant 0 : index
    %4 = vector.load %arg3[%c0_3, %c0_4] : memref<1x256xf32, #tpu.memory_space<vmem>>, vector<1x256xf32>
    %5 = vector.broadcast %4 : vector<1x256xf32> to vector<64x256xf32>
    %6 = arith.addf %3, %5 : vector<64x256xf32>
    %cst_5 = arith.constant 0.000000e+00 : f32
    %7 = vector.broadcast %cst_5 : f32 to vector<64x256xf32>
    %8 = arith.maximumf %6, %7 : vector<64x256xf32>
    %9 = arith.truncf %8 : vector<64x256xf32> to vector<64x256xbf16>
    %c0_6 = arith.constant 0 : index
    %c0_7 = arith.constant 0 : index
    %10 = vector.load %arg4[%c0_6, %c0_7] : memref<256x128xbf16, #tpu.memory_space<vmem>>, vector<256x128xbf16>
    %cst_8 = arith.constant dense<0.000000e+00> : vector<64x128xf32>
    %11 = tpu.matmul %9, %10, %cst_8 {dimension_numbers = #tpu.dot_dimension_numbers<[1], [0], [0], [1], [0, 0, 1, 1], [], []>} : vector<64x256xbf16>, vector<256x128xbf16>, vector<64x128xf32> -> vector<64x128xf32>
    %c0_9 = arith.constant 0 : index
    %c0_10 = arith.constant 0 : index
    %12 = vector.load %arg5[%c0_9, %c0_10] : memref<1x128xf32, #tpu.memory_space<vmem>>, vector<1x128xf32>
    %13 = vector.broadcast %12 : vector<1x128xf32> to vector<64x128xf32>
    %14 = arith.addf %11, %13 : vector<64x128xf32>
    %cst_11 = arith.constant 0.000000e+00 : f32
    %15 = vector.broadcast %cst_11 : f32 to vector<64x128xf32>
    %16 = arith.maximumf %14, %15 : vector<64x128xf32>
    %c0_12 = arith.constant 0 : index
    %c0_13 = arith.constant 0 : index
    %17 = vector.load %arg6[%c0_12, %c0_13] : memref<1x128xf32, #tpu.memory_space<vmem>>, vector<1x128xf32>
    %cst_14 = arith.constant dense<0.000000e+00> : vector<1x64xf32>
    %18 = tpu.matmul %17, %16, %cst_14 {dimension_numbers = #tpu.dot_dimension_numbers<[1], [1], [0], [0], [0, 0, 1, 0], [], []>} : vector<1x128xf32>, vector<64x128xf32>, vector<1x64xf32> -> vector<1x64xf32>
    %c0_15 = arith.constant 0 : index
    %19 = memref.load %arg7[%c0_15] : memref<1xf32, #tpu.memory_space<smem>>
    %20 = vector.broadcast %19 : f32 to vector<1x64xf32>
    %21 = arith.addf %18, %20 : vector<1x64xf32>
    %22 = vector.shape_cast %21 : vector<1x64xf32> to vector<1x1x64xf32>
    %c0_16 = arith.constant 0 : index
    %c0_17 = arith.constant 0 : index
    %c0_18 = arith.constant 0 : index
    %23 = vector.load %arg8[%c0_16, %c0_17, %c0_18] : memref<1x1x64xf32, #tpu.memory_space<vmem>>, vector<1x1x64xf32>
    tpu.vector_store %arg8[%c0_16, %c0_17, %c0_18], %22 {strides = array<i32>} : memref<1x1x64xf32, #tpu.memory_space<vmem>>, vector<1x1x64xf32>,
    return
  }
  func.func @transform_0(%arg0: i32) -> (i32, i32) {
    %c0_i32 = arith.constant 0 : i32
    %c0_i32_0 = arith.constant 0 : i32
    return %arg0, %c0_i32 : i32, i32
  }
  func.func @transform_1(%arg0: i32) -> (i32, i32) {
    %c0_i32 = arith.constant 0 : i32
    %c0_i32_0 = arith.constant 0 : i32
    %c0_i32_1 = arith.constant 0 : i32
    return %c0_i32, %c0_i32_0 : i32, i32
  }
  func.func @transform_2(%arg0: i32) -> (i32, i32) {
    %c0_i32 = arith.constant 0 : i32
    %c0_i32_0 = arith.constant 0 : i32
    %c0_i32_1 = arith.constant 0 : i32
    return %c0_i32, %c0_i32_0 : i32, i32
  }
  func.func @transform_3(%arg0: i32) -> (i32, i32) {
    %c0_i32 = arith.constant 0 : i32
    %c0_i32_0 = arith.constant 0 : i32
    %c0_i32_1 = arith.constant 0 : i32
    return %c0_i32, %c0_i32_0 : i32, i32
  }
  func.func @transform_4(%arg0: i32) -> (i32, i32) {
    %c0_i32 = arith.constant 0 : i32
    %c0_i32_0 = arith.constant 0 : i32
    %c0_i32_1 = arith.constant 0 : i32
    return %c0_i32, %c0_i32_0 : i32, i32
  }
  func.func @transform_5(%arg0: i32) -> (i32, i32) {
    %c0_i32 = arith.constant 0 : i32
    %c0_i32_0 = arith.constant 0 : i32
    %c0_i32_1 = arith.constant 0 : i32
    return %c0_i32, %c0_i32_0 : i32, i32
  }
  func.func @transform_6(%arg0: i32) -> i32 {
    %c0_i32 = arith.constant 0 : i32
    %c0_i32_0 = arith.constant 0 : i32
    return %c0_i32 : i32
  }
  func.func @transform_7(%arg0: i32) -> (i32, i32, i32) {
    %c0_i32 = arith.constant 0 : i32
    %c0_i32_0 = arith.constant 0 : i32
    %c0_i32_1 = arith.constant 0 : i32
    return %arg0, %c0_i32, %c0_i32_0 : i32, i32, i32
  }
}

</mosaic_0001>

<bundles_post_ra>
// kernel: tpu_custom_call.1
= control target key start
LH: loop header
LB: loop body
LE: loop exit
PB: predicated region body
PF: predicated region fallthrough
CT: control target
= control target key end

     0   :  { %s1174_s0 = inlined_call_operand.vmem [shape: f32[200,32], index: 0, kind: input, shape index: {}]   ;;  %s1175_s1 = inlined_call_operand.vmem [shape: bf16[32,256], index: 1, kind: input, shape index: {}]   ;;  %s1176_s2 = inlined_call_operand.vmem [shape: f32[1,256], index: 2, kind: input, shape index: {}]   ;;  %s1177_s3 = inlined_call_operand.vmem [shape: bf16[256,128], index: 3, kind: input, shape index: {}]   ;;  %s1178_s4 = inlined_call_operand.vmem [shape: f32[1,128], index: 4, kind: input, shape index: {}]   ;;  %s1179_s5 = inlined_call_operand.vmem [shape: f32[1,128], index: 5, kind: input, shape index: {}]   ;;  %s1180_s6 = inlined_call_operand.<no memory space> [shape: f32[1], index: 6, kind: input, shape index: {}]   ;;  %s1181_s7 = inlined_call_operand.hbm [shape: f32[4,1,64], index: 7, kind: output, shape index: {}]  }
   0x1   :  { %12 = sst [smem:[#allocation2]] %s1180_s6 }
   0x2   :  { %13 = vsyncpa [#allocation4], 0 }
   0x3   :  { %15 = vsyncpa [#allocation4 + $0x1], 0  ;;  %s991_s26 = smov 0   ;;  %s993_s27 = smov 0  }
   0x4   :  { %s995_s28 = smov 0   ;;  %s997_s29 = smov 0  }
   0x5 LB: > { %s1012_s6 = sadd.s32 4294967295, %s946_s29   ;;  %s728_s30 = sadd.s32 4294967294, %s946_s29   ;;  %s946_s29 = sphi %s997_s29, %s1187_s29   ;;  %s942_s28 = sphi %s995_s28, %s1186_s28   ;;  %s938_s27 = sphi %s993_s27, %s1185_s27   ;;  %s934_s26 = sphi %s991_s26, %s1184_s26  }
   0x6   : > { %s1016_s8 = sadd.s32 1, %s946_s29   ;;  %s180_s9 = sadd.s32 1, %s942_s28 }
   0x7   : > { %s177_s10 = ssub.s32 %s946_s29, %s1016_s8  ;;  %p190_p0 = scmp.ne.s32.totalorder %s942_s28, %s938_s27 }
   0x8   : > { %p178_p1 = scmp.eq.s32.totalorder %s177_s10, 0  ;;  %p191_p2 = scmp.eq.s32.totalorder %s1012_s6, 3 }
   0x9   : > { %p196_p3 = scmp.ne.s32.totalorder %s938_s27, %s934_s26  ;;  %p197_p4 = scmp.eq.s32.totalorder %s728_s30, 3 }
   0xa   : > { %s1027_s11 = scalar_select %p178_p1, %s942_s28, %s180_s9  }
   0xb   : > { %p1029_p5 = por %p191_p2, %p190_p0  ;;  %p1033_p6 = por %p197_p4, %p196_p3 }
   0xc   : > { %p731_p7 = scmp.ge.s32.totalorder %s946_s29, 1  ;;  %p250_p8 = scmp.lt.s32.totalorder %s946_s29, 5 }
   0xe   : > { %p251_p9 = pnand %p731_p7, %p250_p8 }
   0xf   : > { %s732_s15 = sshll.u32 (!%p251_p9), %s1012_s6, 3  ;;  %s636_s10 = sld [smem:[#allocation2]] (!%p251_p9) }
  0x10   : > { %254 = sbr.rel (%p251_p9) target bundleno = 527 (0x20f), region = 48  ;;  %p290_p10 = scmp.lt.s32.totalorder (!%p251_p9), %s732_s15, 24 }
  0x11   : > { %s283_s14 = sand.u32 (!%p251_p9), 1, %s938_s27   ;;  %s669_s17 = scalar_lea.hbm (!%p251_p9), %s1181_s7, %s1012_s6 }
  0x12   : > { %s284_s18 = scalar_lea.vmem (!%p251_p9), [#allocation3], %s283_s14  ;;  %s673_s21 = sshll.u32 (!%p251_p9), %s669_s17, 4  ;;  %s674_s21 = int_to_ptr.hbm [resolvable:$true] %s673_s21 }
  0x13   : > { %s671_s20 = sshll.u32 (!%p251_p9), %s284_s18, 4  ;;  %s661_s22 = scalar_lea.sflag (!%p251_p9), [#allocation4], %s283_s14  ;;  %s672_s20 = int_to_ptr.vmem [resolvable:$true] %s671_s20 }
  0x14   : > { %s898_s23 = sshra.s32 (!%p251_p9), %s674_s21, 4  ;;  %s904_s30 = scalar_lea.hbm (!%p251_p9), %s1181_s7, 4  ;;  %s899_s23 = int_to_ptr.hbm [resolvable:$true] %s898_s23 }
  0x15   : > { %v744_v0 = vld [vmem:[%s1175_s1 + $0x10] sm:$0xf]  ;;  %v827_v1 = vld [vmem:[%s1175_s1 + $0x14] sm:$0xf0]  ;;  %v826_v2 = vld [vmem:[%s1175_s1 + $0x14] sm:$0xf]  ;;  %p905_p0 = scmp.lt.s32.totalorder %s899_s23, %s1181_s7 }
  0x16   : > { %v745_v3 = vor.u32 %v827_v1, %v744_v0  ;;  %v746_v4 = vld [vmem:[%s1175_s1 + $0x18] sm:$0xf0]  ;;  %v736_v5 = vld [vmem:[%s1175_s1] sm:$0xf]  ;;  %v825_v6 = vld [vmem:[%s1175_s1 + $0x4] sm:$0xf0] }
  0x17   : > { %v749_v7 = vor.u32 %v826_v2, %v746_v4  ;;  %v824_v8 = vld [vmem:[%s1175_s1 + $0x4] sm:$0xf]  ;;  %v738_v9 = vld [vmem:[%s1175_s1 + $0x8] sm:$0xf0]  ;;  %v737_v10 = vor.u32 %v825_v6, %v736_v5  ;;  %s1189_s15 = smov (!%p290_p10, %s732_s15), 24  ;;  %vm342_vm0 = vcmask 261120  }
  0x18   : > { %361 = vmatpush.bf16.msra.mxu0 %v745_v3  ;;  %v741_v11 = vor.u32 %v824_v8, %v738_v9  ;;  %s733_s16 = sshll.u32 %s1189_s15, 3  ;;  %v835_v18 = vld [vmem:[%s1177_s3 + $0x38] sm:$0xff]  ;;  %v834_v20 = vld [vmem:[%s1177_s3 + $0x30] sm:$0xff]  ;;  %v833_v22 = vld [vmem:[%s1177_s3 + $0x28] sm:$0xff]  ;;  %vm658_vm1 = vcmask 516096   ;;  %s900_s24 = scalar_lea.hbm %s899_s23, 1 }
  0x19   : > { %390 = vmatpush.bf16.msra.mxu1 %v749_v7  ;;  %s1067_s19 = scalar_lea.vmem %s1174_s0, %s733_s16  ;;  %v843_v19 = vld [vmem:[%s1177_s3 + $0x78] sm:$0xff]  ;;  %569 = vmatpush.bf16.msra.mxu2 %v835_v18  ;;  %v842_v21 = vld [vmem:[%s1177_s3 + $0x70] sm:$0xff]  ;;  %v841_v23 = vld [vmem:[%s1177_s3 + $0x68] sm:$0xff]  ;;  %p901_p11 = scmp.ne.s32.totalorder %s899_s23, %s900_s24 }
  0x1a   : > { %v300_v12 = vld [vmem:[%s1067_s19] sm:$0xff]  ;;  %v301_v13 = vld [vmem:[%s1067_s19 + $0x8] sm:$0xff]  ;;  %v302_v15 = vld [vmem:[%s1067_s19 + $0x10] sm:$0xff]  ;;  %598 = vmatpush.bf16.msra.mxu3 %v843_v19  ;;  %p906_p1 = scmp.lt.s32.totalorder %s904_s30, %s900_s24 }
  0x1b   : > { %v308_v14 = vpack.c.bf16 %v301_v13, %v300_v12  ;;  %v303_v16 = vld [vmem:[%s1067_s19 + $0x18] sm:$0xff]  ;;  %v304_v24 = vld [vmem:[%s1067_s19 + $0x20] sm:$0xff]  ;;  %v305_v25 = vld [vmem:[%s1067_s19 + $0x28] sm:$0xff]  ;;  %p902_p12 = pnand %p901_p11, %p1029_p5 }
  0x1c   : > { %362 = vmatpush.bf16.msra.mxu0 %v737_v10  ;;  %v309_v17 = vpack.c.bf16 %v303_v16, %v302_v15  ;;  %v832_v26 = vld [vmem:[%s1177_s3 + $0x20] sm:$0xff]  ;;  %v310_v28 = vpack.c.bf16 %v305_v25, %v304_v24  ;;  %v306_v29 = vld [vmem:[%s1067_s19 + $0x30] sm:$0xff]  ;;  %v307_v30 = vld [vmem:[%s1067_s19 + $0x38] sm:$0xff]  ;;  %p907_p2 = por %p906_p1, %p905_p0 }
  0x1d   : > { %391 = vmatpush.bf16.msra.mxu1 %v741_v11  ;;  %570 = vmatpush.bf16.msra.mxu2 %v834_v20  ;;  %v840_v27 = vld [vmem:[%s1177_s3 + $0x60] sm:$0xff]  ;;  %v311_v31 = vpack.c.bf16 %v307_v30, %v306_v29  ;;  %v831_v32 = vld [vmem:[%s1177_s3 + $0x18] sm:$0xff]  ;;  %v830_v34 = vld [vmem:[%s1177_s3 + $0x10] sm:$0xff]  ;;  %p903_p13 = pneg %p902_p12 }
  0x1e   : > { %599 = vmatpush.bf16.msra.mxu3 %v842_v21  ;;  %v839_v33 = vld [vmem:[%s1177_s3 + $0x58] sm:$0xff]  ;;  %v838_v35 = vld [vmem:[%s1177_s3 + $0x50] sm:$0xff]  ;;  %v829_v36 = vld [vmem:[%s1177_s3 + $0x8] sm:$0xff] }
  0x1f   : > { %750 = vmatmul.msk.bf16.vlgmr.msra.gmra.mxu0 %vm342_vm0, %v308_v14  ;;  %v837_v37 = vld [vmem:[%s1177_s3 + $0x48] sm:$0xff]  ;;  %v828_v38 = vld [vmem:[%s1177_s3] sm:$0xff]  ;;  %p908_p3 = pnand %p907_p2, %p903_p13 }
  0x20   : > { %754 = vmatmul.msk.bf16.vlgmr.msra.gmra.mxu1 %vm342_vm0, %v308_v14  ;;  %v836_v39 = vld [vmem:[%s1177_s3 + $0x40] sm:$0xff] }
  0x21   : > { %571 = vmatpush.bf16.msra.mxu2 %v833_v22  ;;  %v316_v40 = vld [vmem:[%s1176_s2] sm:$0x3] }
  0x22   : > { %600 = vmatpush.bf16.msra.mxu3 %v841_v23  ;;  %v318_v43 = vperm.slane %v316_v40, 0  ;;  %v319_v44 = vperm.slane %v316_v40, 1 }
  0x25   : > { %572 = vmatpush.bf16.msra.mxu2 %v832_v26 }
  0x26   : > { %601 = vmatpush.bf16.msra.mxu3 %v840_v27 }
  0x29   : > { %573 = vmatpush.bf16.msra.mxu2 %v831_v32 }
  0x2a   : > { %602 = vmatpush.bf16.msra.mxu3 %v839_v33 }
  0x2d   : > { %574 = vmatpush.bf16.msra.mxu2 %v830_v34 }
  0x2e   : > { %603 = vmatpush.bf16.msra.mxu3 %v838_v35  ;;  %v883_v35 = vld [vmem:[%s1178_s4] ss:$0 sm:$0xff] }
  0x2f   : > { %751 = vmatmul.msk.bf16.gmra.mxu0 %vm342_vm0, %v309_v17 }
  0x30   : > { %755 = vmatmul.msk.bf16.gmra.mxu1 %vm342_vm0, %v309_v17 }
  0x31   : > { %575 = vmatpush.bf16.msra.mxu2 %v829_v36 }
  0x32   : > { %604 = vmatpush.bf16.msra.mxu3 %v837_v37 }
  0x35   : > { %576 = vmatpush.bf16.msra.mxu2 %v828_v38 }
  0x36   : > { %605 = vmatpush.bf16.msra.mxu3 %v836_v39 }
  0x3f   : > { %752 = vmatmul.msk.bf16.gmra.mxu0 %vm342_vm0, %v310_v28 }
  0x40   : > { %756 = vmatmul.msk.bf16.gmra.mxu1 %vm342_vm0, %v310_v28 }
  0x4f   : > { %753 = vmatmul.msk.bf16.gmra.mxu0 %vm342_vm0, %v311_v31 }
  0x50   : > { %757 = vmatmul.msk.bf16.gmra.mxu1 %vm342_vm0, %v311_v31 }
  0x9c   : > { %v364_v41 = vpop.f32.mrf.mxu0 }
  0x9d   : > { %v393_v42 = vpop.f32.mrf.mxu1  ;;  %v365_v45 = vadd.f32 %v364_v41, %v318_v43 }
  0x9e   : > { %v394_v46 = vadd.f32 %v393_v42, %v319_v44 }
  0x9f   : > { %v413_v51 = vmax.f32 %v365_v45, 0.0 }
  0xa0   : > { %v414_v52 = vmax.f32 %v394_v46, 0.0 }
  0xa4   : > { %v366_v47 = vpop.f32.mrf.mxu0 }
  0xa5   : > { %v395_v48 = vpop.f32.mrf.mxu1  ;;  %v367_v49 = vadd.f32 %v366_v47, %v318_v43 }
  0xa6   : > { %v396_v50 = vadd.f32 %v395_v48, %v319_v44 }
  0xa7   : > { %v415_v53 = vmax.f32 %v367_v49, 0.0 }
  0xa8   : > { %v416_v54 = vmax.f32 %v396_v50, 0.0 }
  0xa9   : > { %v429_v55 = vpack.c.bf16 %v415_v53, %v413_v51 }
  0xaa   : > { %v430_v56 = vpack.c.bf16 %v416_v54, %v414_v52 }
  0xab   : > { %577 = vmatmul.bf16.vlgmr.msra.gmra.mxu2 %v429_v55 }
  0xac   : > { %606 = vmatmul.bf16.vlgmr.msra.gmra.mxu3 %v430_v56  ;;  %v369_v57 = vpop.f32.mrf.mxu0 }
  0xad   : > { %v398_v58 = vpop.f32.mrf.mxu1  ;;  %v370_v59 = vadd.f32 %v369_v57, %v318_v43 }
  0xae   : > { %v399_v60 = vadd.f32 %v398_v58, %v319_v44 }
  0xaf   : > { %v417_v1 = vmax.f32 %v370_v59, 0.0 }
  0xb0   : > { %v418_v2 = vmax.f32 %v399_v60, 0.0 }
  0xb4   : > { %v371_v61 = vpop.f32.mrf.mxu0 }
  0xb5   : > { %v400_v62 = vpop.f32.mrf.mxu1  ;;  %v372_v63 = vadd.f32 %v371_v61, %v318_v43 }
  0xb6   : > { %v401_v0 = vadd.f32 %v400_v62, %v319_v44 }
  0xb7   : > { %v419_v3 = vmax.f32 %v372_v63, 0.0 }
  0xb8   : > { %v420_v4 = vmax.f32 %v401_v0, 0.0 }
  0xb9   : > { %v431_v5 = vpack.c.bf16 %v419_v3, %v417_v1 }
  0xba   : > { %v432_v6 = vpack.c.bf16 %v420_v4, %v418_v2 }
  0xbb   : > { %582 = vmatmul.bf16.gmra.mxu2 %v431_v5 }
  0xbc   : > { %611 = vmatmul.bf16.gmra.mxu3 %v432_v6  ;;  %v374_v7 = vpop.f32.mrf.mxu0 }
  0xbd   : > { %v403_v8 = vpop.f32.mrf.mxu1  ;;  %v375_v9 = vadd.f32 %v374_v7, %v318_v43 }
  0xbe   : > { %v404_v10 = vadd.f32 %v403_v8, %v319_v44 }
  0xbf   : > { %v421_v15 = vmax.f32 %v375_v9, 0.0 }
  0xc0   : > { %v422_v16 = vmax.f32 %v404_v10, 0.0 }
  0xc4   : > { %v376_v11 = vpop.f32.mrf.mxu0 }
  0xc5   : > { %v405_v12 = vpop.f32.mrf.mxu1  ;;  %v377_v13 = vadd.f32 %v376_v11, %v318_v43 }
  0xc6   : > { %v406_v14 = vadd.f32 %v405_v12, %v319_v44  ;;  %v635_v12 = vld [vmem:[%s1179_s5] sm:$0x1] }
  0xc7   : > { %v423_v17 = vmax.f32 %v377_v13, 0.0  ;;  %v637_v13 = vstv %s636_s10 }
  0xc8   : > { %v424_v18 = vmax.f32 %v406_v14, 0.0 }
  0xc9   : > { %v433_v19 = vpack.c.bf16 %v423_v17, %v421_v15 }
  0xca   : > { %v434_v20 = vpack.c.bf16 %v424_v18, %v422_v16 }
  0xcb   : > { %587 = vmatmul.bf16.gmra.mxu2 %v433_v19 }
  0xcc   : > { %616 = vmatmul.bf16.gmra.mxu3 %v434_v20  ;;  %v379_v21 = vpop.f32.mrf.mxu0 }
  0xcd   : > { %v408_v22 = vpop.f32.mrf.mxu1  ;;  %v380_v23 = vadd.f32 %v379_v21, %v318_v43 }
  0xce   : > { %v409_v24 = vadd.f32 %v408_v22, %v319_v44 }
  0xcf   : > { %v425_v29 = vmax.f32 %v380_v23, 0.0 }
  0xd0   : > { %v426_v30 = vmax.f32 %v409_v24, 0.0 }
  0xd4   : > { %v381_v25 = vpop.f32.mrf.mxu0 }
  0xd5   : > { %v410_v26 = vpop.f32.mrf.mxu1  ;;  %v382_v27 = vadd.f32 %v381_v25, %v318_v43 }
  0xd6   : > { %v411_v28 = vadd.f32 %v410_v26, %v319_v44 }
  0xd7   : > { %v427_v31 = vmax.f32 %v382_v27, 0.0 }
  0xd8   : > { %v428_v32 = vmax.f32 %v411_v28, 0.0 }
  0xd9   : > { %v435_v33 = vpack.c.bf16 %v427_v31, %v425_v29 }
  0xda   : > { %v436_v34 = vpack.c.bf16 %v428_v32, %v426_v30 }
  0xdb   : > { %592 = vmatmul.bf16.gmra.mxu2 %v435_v33 }
  0xdc   : > { %621 = vmatmul.bf16.gmra.mxu3 %v436_v34 }
 0x12e   : > { %v578_v36 = vpop.f32.mrf.mxu2 }
 0x12f   : > { %v607_v37 = vpop.f32.mrf.mxu3  ;;  %v579_v38 = vadd.f32 %v883_v35, %v578_v36 }
 0x131   : > { %v608_v39 = vadd.f32 %v607_v37, %v579_v38 }
 0x133   : > { %v627_v11 = vmax.f32 %v608_v39, 0.0 }
 0x136   : > { %v580_v40 = vpop.f32.mrf.mxu2 }
 0x137   : > { %v609_v41 = vpop.f32.mrf.mxu3  ;;  %v581_v42 = vadd.f32 %v883_v35, %v580_v40 }
 0x139   : > { %v610_v43 = vadd.f32 %v609_v41, %v581_v42 }
 0x13b   : > { %v628_v10 = vmax.f32 %v610_v43, 0.0 }
 0x13e   : > { %v583_v44 = vpop.f32.mrf.mxu2 }
 0x13f   : > { %v612_v45 = vpop.f32.mrf.mxu3  ;;  %v584_v4 = vadd.f32 %v883_v35, %v583_v44 }
 0x141   : > { %v613_v7 = vadd.f32 %v612_v45, %v584_v4 }
 0x143   : > { %v629_v9 = vmax.f32 %v613_v7, 0.0 }
 0x146   : > { %v585_v46 = vpop.f32.mrf.mxu2 }
 0x147   : > { %v614_v47 = vpop.f32.mrf.mxu3  ;;  %v586_v1 = vadd.f32 %v883_v35, %v585_v46 }
 0x149   : > { %v615_v5 = vadd.f32 %v614_v47, %v586_v1 }
 0x14b   : > { %v630_v8 = vmax.f32 %v615_v5, 0.0 }
 0x14e   : > { %v588_v48 = vpop.f32.mrf.mxu2 }
 0x14f   : > { %v617_v49 = vpop.f32.mrf.mxu3  ;;  %v589_v62 = vadd.f32 %v883_v35, %v588_v48 }
 0x151   : > { %v618_v2 = vadd.f32 %v617_v49, %v589_v62 }
 0x153   : > { %v631_v6 = vmax.f32 %v618_v2, 0.0 }
 0x156   : > { %v590_v50 = vpop.f32.mrf.mxu2 }
 0x157   : > { %v619_v51 = vpop.f32.mrf.mxu3  ;;  %v591_v59 = vadd.f32 %v883_v35, %v590_v50 }
 0x159   : > { %v620_v63 = vadd.f32 %v619_v51, %v591_v59 }
 0x15b   : > { %v632_v3 = vmax.f32 %v620_v63, 0.0 }
 0x15e   : > { %v593_v52 = vpop.f32.mrf.mxu2 }
 0x15f   : > { %v622_v53 = vpop.f32.mrf.mxu3  ;;  %v594_v55 = vadd.f32 %v883_v35, %v593_v52 }
 0x161   : > { %v623_v60 = vadd.f32 %v622_v53, %v594_v55 }
 0x163   : > { %v633_v0 = vmax.f32 %v623_v60, 0.0 }
 0x166   : > { %v595_v54 = vpop.f32.mrf.mxu2 }
 0x167   : > { %v596_v56 = vadd.f32 %v883_v35, %v595_v54  ;;  %v624_v57 = vpop.f32.mrf.mxu3 }
 0x169   : > { %v625_v58 = vadd.f32 %v624_v57, %v596_v56 }
 0x16b   : > { %v634_v61 = vmax.f32 %v625_v58, 0.0 }
 0x16d   : > { %646 = vmatpush.xpose.msrb.mxu0 %v634_v61 }
 0x171   : > { %647 = vmatpush.xpose.msrb.mxu0 %v633_v0 }
 0x175   : > { %648 = vmatpush.xpose.msrb.mxu0 %v632_v3 }
 0x179   : > { %649 = vmatpush.xpose.msrb.mxu0 %v631_v6 }
 0x17d   : > { %650 = vmatpush.xpose.msrb.mxu0 %v630_v8 }
 0x181   : > { %651 = vmatpush.xpose.msrb.mxu0 %v629_v9 }
 0x185   : > { %652 = vmatpush.xpose.msrb.mxu0 %v628_v10 }
 0x189   : > { %653 = vmatpush.xpose.msrb.mxu0 %v627_v11 }
 0x18c   : > { %654 = vmatmul.f32.vlgmr.msrb.gmra.mxu0 %v635_v12 }
 0x209   : > { %v655_v14 = vpop.f32.mrf.mxu0 }
 0x20a   : > { %v656_v15 = vadd.f32 %v655_v14, %v637_v13 }
 0x20c   : > { %659 = vst.msk [vmem:[%s284_s18] sm:$0x1] %vm658_vm1, %v656_v15 }
 0x20d   : > { %911 = shalt.err (!%p908_p3)
}
 0x20e   : > { %844 = dma.vmem_to_hbm [thread:$0]  (%p1029_p5), %s672_s20, 16, %s674_s21, %s661_s22  }
 0x20f PF: > { %p850_p4 = scmp.ge.s32.totalorder %s946_s29, 2  ;;  %s685_s10 = sand.u32 1, %s934_s26  }
 0x210   : > { %s686_s14 = scalar_lea.sflag [#allocation4], %s685_s10 }
 0x211   : > { %p847_p7 = pnand %p850_p4, %p1033_p6 }
 0x213   : > { %p848_p8 = pneg %p847_p7 }
 0x215   : > { %929 = dma.done.wait (%p848_p8), %s686_s14, 16  }
 0x216   : > { %931 = vsyncadd (%p848_p8), %s686_s14, 4294967280  ;;  %p18_p9 = scmp.ge.s32.totalorder %s1016_s8, 6   ;;  %s1184_s26 = smov %s938_s27 }
 0x217   : > { %s1185_s27 = smov %s942_s28  ;;  %s1186_s28 = smov %s1027_s11 }
 0x218   : > { %s1187_s29 = smov %s1016_s8  ;;  %20 = sbr.rel (!%p18_p9) target bundleno = 5 (0x5), region = 83 }
 0x21d   :  { %691 = vsyncpa [#allocation4], 1 }
 0x21e   :  { %693 = vsyncpa [#allocation4 + $0x1], 1 }

</bundles_post_ra>
